<compile_context>
chip_gen: v5e
topology: v5e:2x2
jax: 0.10.0
libtpu: 0.0.40
codegen_flags: <defaults>
</compile_context>

<pallas_src>
import numpy as np
import jax
import jax.numpy as jnp
from jax import lax
from jax.experimental import pallas as pl
from jax.experimental.pallas import tpu as pltpu


def _round_up(x, m):
    return ((x + m - 1) // m) * m


# ----------------------------------------------------------------------------- kernel
def actor_critic_kernel(state_ref, act_ref,
                        w1_ref, b1_ref, w2_ref, b2_ref, w3_ref, b3_ref,
                        out_ref):
    """One batch tile of the fused actor+critic evaluate()."""
    A = w3_ref.shape[1] - 1            # actor logits width (critic is last col)
    tile_b = state_ref.shape[0]

    x = state_ref[...]                                            # (tile_b, S) f32

    # fused layer 1: hidden = [actor_h1 | critic_h1]  -> (tile_b, 128)
    h = jnp.tanh(jnp.dot(x.astype(jnp.bfloat16), w1_ref[...],
                         preferred_element_type=jnp.float32) + b1_ref[...])
    # fused layer 2 (block-diagonal weights keep the two heads independent)
    h = jnp.tanh(jnp.dot(h.astype(jnp.bfloat16), w2_ref[...],
                         preferred_element_type=jnp.float32) + b2_ref[...])
    # fused layer 3: columns [0:A] = actor logits, column A = critic value
    head = (jnp.dot(h.astype(jnp.bfloat16), w3_ref[...],
                    preferred_element_type=jnp.float32) + b3_ref[...])

    logits = head[:, :A]                                          # (tile_b, A)
    value = head[:, A:A + 1]                                      # (tile_b, 1)

    # numerically stable softmax statistics (f32, VPU/XLU/EUP)
    m = jnp.max(logits, axis=-1, keepdims=True)
    shifted = logits - m
    e = jnp.exp(shifted)
    z = jnp.sum(e, axis=-1, keepdims=True)
    inv_z = pl.reciprocal(z, approx=True)                         # EUP vrcp
    log_z = jnp.log(z)

    # Categorical.log_prob(action): logp = shifted[action] - log z
    act = act_ref[...]                                            # (tile_b, 1) int32
    col = lax.broadcasted_iota(jnp.int32, (tile_b, A), 1)
    sel = jnp.sum(jnp.where(col == act, shifted, 0.0),
                  axis=-1, keepdims=True)                         # (tile_b, 1)
    logp = sel - log_z

    # Categorical.entropy(): log z - sum(e * shifted) / z
    ent = log_z - jnp.sum(e * shifted, axis=-1, keepdims=True) * inv_z

    # lane-dense packed output: lane0=logp, lane1=value, lane2=entropy, rest 0
    lane = lax.broadcasted_iota(jnp.int32, out_ref.shape, 1)
    out_ref[...] = jnp.where(lane == 0, logp,
                             jnp.where(lane == 1, value,
                                       jnp.where(lane == 2, ent, 0.0)))


# ----------------------------------------------------------------------------- wrapper
def pack_params(p):
    """Fuse actor/critic linear layers into 128-lane weights (bf16 for MXU)."""
    S, H = p["w1a"].shape
    A = p["w3a"].shape[1]
    w1 = jnp.concatenate([p["w1a"], p["w1v"]], axis=1)            # (S, 2H)
    b1 = jnp.concatenate([p["b1a"], p["b1v"]], axis=1)            # (1, 2H)
    w2 = jnp.zeros((2 * H, 2 * H), jnp.float32)
    w2 = w2.at[:H, :H].set(p["w2a"]).at[H:, H:].set(p["w2v"])     # block-diag
    b2 = jnp.concatenate([p["b2a"], p["b2v"]], axis=1)            # (1, 2H)
    w3 = jnp.zeros((2 * H, A + 1), jnp.float32)
    w3 = w3.at[:H, :A].set(p["w3a"]).at[H:, A:].set(p["w3v"])     # (2H, A+1)
    b3 = jnp.concatenate([p["b3a"], p["b3v"]], axis=1)            # (1, A+1)
    return dict(w1=w1.astype(jnp.bfloat16), b1=b1,
                w2=w2.astype(jnp.bfloat16), b2=b2,
                w3=w3.astype(jnp.bfloat16), b3=b3)


def actor_critic_evaluate(state, action, packed, *, tile_b=1024):
    """Pallas equivalent of ActorCritic.evaluate(state, action).

    Returns (action_logprobs (B,), state_value (B,), dist_entropy (B,)).
    """
    B, S = state.shape
    H2 = packed["w1"].shape[1]          # fused hidden width (2*64 = 128)
    A = packed["w3"].shape[1] - 1

    # choose the batch tile: multiple of 8 sublanes, no bigger than the batch
    tile_b = max(8, _round_up(min(tile_b, B), 8))
    B_pad = _round_up(B, tile_b)
    if B_pad != B:
        state = jnp.pad(state, ((0, B_pad - B), (0, 0)))
        action = jnp.pad(action, ((0, B_pad - B),))
    act2d = action.astype(jnp.int32).reshape(B_pad, 1)

    grid = (B_pad // tile_b,)

    flops = 2 * B_pad * (S * H2 + H2 * H2 + H2 * (A + 1))
    transcendentals = B_pad * (2 * H2 + A + 2)
    weight_bytes = 2 * (S * H2 + H2 * H2 + H2 * (A + 1)) \
        + 4 * (2 * H2 + (A + 1))
    bytes_accessed = B_pad * (4 * S + 4) + B_pad * 4 * 128 + weight_bytes

    out = pl.pallas_call(
        actor_critic_kernel,
        out_shape=jax.ShapeDtypeStruct((B_pad, 128), jnp.float32),
        grid_spec=pltpu.PrefetchScalarGridSpec(
            num_scalar_prefetch=0,
            grid=grid,
            in_specs=[
                pl.BlockSpec((tile_b, S), lambda i: (i, 0)),       # state tile
                pl.BlockSpec((tile_b, 1), lambda i: (i, 0)),       # action tile
                pl.BlockSpec((S, H2), lambda i: (0, 0)),           # fused W1
                pl.BlockSpec((1, H2), lambda i: (0, 0)),           # fused b1
                pl.BlockSpec((H2, H2), lambda i: (0, 0)),          # fused W2
                pl.BlockSpec((1, H2), lambda i: (0, 0)),           # fused b2
                pl.BlockSpec((H2, A + 1), lambda i: (0, 0)),       # fused W3
                pl.BlockSpec((1, A + 1), lambda i: (0, 0)),        # fused b3
            ],
            out_specs=pl.BlockSpec((tile_b, 128), lambda i: (i, 0)),
        ),
        compiler_params=pltpu.CompilerParams(
            dimension_semantics=("parallel",)),
        cost_estimate=pl.CostEstimate(flops=flops,
                                      transcendentals=transcendentals,
                                      bytes_accessed=bytes_accessed),
    )(state, act2d,
      packed["w1"], packed["b1"], packed["w2"], packed["b2"],
      packed["w3"], packed["b3"])

    return out[:B, 0], out[:B, 1], out[:B, 2]


# ----------------------------------------------------------------------------- init / reference
def init_params(key, state_dim, action_dim, hidden=64):
    """PyTorch-nn.Linear-like uniform fan-in init; W stored as (in, out)."""
    ks = jax.random.split(key, 12)

    def lin(kw, kb, fan_in, fan_out):
        bound = 1.0 / np.sqrt(fan_in)
        w = jax.random.uniform(kw, (fan_in, fan_out), jnp.float32, -bound, bound)
        b = jax.random.uniform(kb, (1, fan_out), jnp.float32, -bound, bound)
        return w, b

    w1a, b1a = lin(ks[0], ks[1], state_dim, hidden)
    w2a, b2a = lin(ks[2], ks[3], hidden, hidden)
    w3a, b3a = lin(ks[4], ks[5], hidden, action_dim)
    w1v, b1v = lin(ks[6], ks[7], state_dim, hidden)
    w2v, b2v = lin(ks[8], ks[9], hidden, hidden)
    w3v, b3v = lin(ks[10], ks[11], hidden, 1)
    return dict(w1a=w1a, b1a=b1a, w2a=w2a, b2a=b2a, w3a=w3a, b3a=b3a,
                w1v=w1v, b1v=b1v, w2v=w2v, b2v=b2v, w3v=w3v, b3v=b3v)


def reference_evaluate(state, action, p):
    """Pure-JAX f32 reference mirroring the PyTorch ActorCritic.evaluate."""
    h = jnp.tanh(state @ p["w1a"] + p["b1a"])
    h = jnp.tanh(h @ p["w2a"] + p["b2a"])
    logits = h @ p["w3a"] + p["b3a"]
    logp_all = jax.nn.log_softmax(logits, axis=-1)
    probs = jnp.exp(logp_all)
    logp = jnp.take_along_axis(logp_all, action[:, None], axis=-1)[:, 0]
    ent = -jnp.sum(probs * logp_all, axis=-1)
    hv = jnp.tanh(state @ p["w1v"] + p["b1v"])
    hv = jnp.tanh(hv @ p["w2v"] + p["b2v"])
    value = (hv @ p["w3v"] + p["b3v"])[:, 0]
    return logp, value, ent


# TODO(synk): ActorCritic.act() (Categorical sampling + memory buffer side
# effects) is a host-side RNG/control-flow path and is not implemented here.

if __name__ == "__main__":
    STATE_DIM = 8
    ACTION_DIM = 4
    BATCH = 128            # small demo; tile_b=64 exercises a 2-step batch grid

    key = jax.random.PRNGKey(0)
    k_params, k_state, k_act = jax.random.split(key, 3)

    params = init_params(k_params, STATE_DIM, ACTION_DIM)
    packed = pack_params(params)

    state = jax.random.normal(k_state, (BATCH, STATE_DIM), jnp.float32)
    action = jax.random.randint(k_act, (BATCH,), 0, ACTION_DIM, jnp.int32)

    logp, value, ent = actor_critic_evaluate(state, action, packed, tile_b=64)
    jax.block_until_ready((logp, value, ent))

    # sanity check vs f32 reference (bf16 MXU operands -> relaxed tolerance)
    logp_r, value_r, ent_r = reference_evaluate(state, action, params)
    np.testing.assert_allclose(np.asarray(logp), np.asarray(logp_r), atol=5e-2, rtol=5e-2)
    np.testing.assert_allclose(np.asarray(value), np.asarray(value_r), atol=5e-2, rtol=5e-2)
    np.testing.assert_allclose(np.asarray(ent), np.asarray(ent_r), atol=5e-2, rtol=5e-2)

    print("KERNEL_OK")
</pallas_src>

<mosaic_0001>
module attributes {stable_mosaic.version = 11 : i64} {
  func.func @actor_critic_kernel(%arg0: i32, %arg1: memref<64x8xf32, #tpu.memory_space<vmem>>, %arg2: memref<64x1xi32, #tpu.memory_space<vmem>>, %arg3: memref<8x128xbf16, #tpu.memory_space<vmem>>, %arg4: memref<1x128xf32, #tpu.memory_space<vmem>>, %arg5: memref<128x128xbf16, #tpu.memory_space<vmem>>, %arg6: memref<1x128xf32, #tpu.memory_space<vmem>>, %arg7: memref<128x5xbf16, #tpu.memory_space<vmem>>, %arg8: memref<1x5xf32, #tpu.memory_space<vmem>>, %arg9: memref<64x128xf32, #tpu.memory_space<vmem>>) attributes {dimension_semantics = [#tpu.dimension_semantics<parallel>], iteration_bounds = array<i64: 2>, scalar_prefetch = 0 : i64, scratch_operands = 0 : i64, tpu.core_type = #tpu.core_type<tc>, window_params = [{transform_indices = @transform_0, window_bounds = array<i64: 64, 8>}, {transform_indices = @transform_1, window_bounds = array<i64: 64, 1>}, {pipeline_mode = #tpu.pipeline_mode<synchronous>, transform_indices = @transform_2, window_bounds = array<i64: 8, 128>}, {pipeline_mode = #tpu.pipeline_mode<synchronous>, transform_indices = @transform_3, window_bounds = array<i64: 1, 128>}, {pipeline_mode = #tpu.pipeline_mode<synchronous>, transform_indices = @transform_4, window_bounds = array<i64: 128, 128>}, {pipeline_mode = #tpu.pipeline_mode<synchronous>, transform_indices = @transform_5, window_bounds = array<i64: 1, 128>}, {pipeline_mode = #tpu.pipeline_mode<synchronous>, transform_indices = @transform_6, window_bounds = array<i64: 128, 5>}, {pipeline_mode = #tpu.pipeline_mode<synchronous>, transform_indices = @transform_7, window_bounds = array<i64: 1, 5>}, {transform_indices = @transform_8, window_bounds = array<i64: 64, 128>}]} {
    %c0 = arith.constant 0 : index
    %c0_0 = arith.constant 0 : index
    %0 = vector.load %arg1[%c0, %c0_0] : memref<64x8xf32, #tpu.memory_space<vmem>>, vector<64x8xf32>
    %1 = arith.truncf %0 : vector<64x8xf32> to vector<64x8xbf16>
    %c0_1 = arith.constant 0 : index
    %c0_2 = arith.constant 0 : index
    %2 = vector.load %arg3[%c0_1, %c0_2] : memref<8x128xbf16, #tpu.memory_space<vmem>>, vector<8x128xbf16>
    %cst = arith.constant dense<0.000000e+00> : vector<64x128xf32>
    %3 = tpu.matmul %1, %2, %cst {dimension_numbers = #tpu.dot_dimension_numbers<[1], [0], [0], [1], [0, 0, 1, 1], [], []>} : vector<64x8xbf16>, vector<8x128xbf16>, vector<64x128xf32> -> vector<64x128xf32>
    %c0_3 = arith.constant 0 : index
    %c0_4 = arith.constant 0 : index
    %4 = vector.load %arg4[%c0_3, %c0_4] : memref<1x128xf32, #tpu.memory_space<vmem>>, vector<1x128xf32>
    %5 = vector.broadcast %4 : vector<1x128xf32> to vector<64x128xf32>
    %6 = arith.addf %3, %5 : vector<64x128xf32>
    %7 = math.tanh %6 : vector<64x128xf32>
    %8 = arith.truncf %7 : vector<64x128xf32> to vector<64x128xbf16>
    %c0_5 = arith.constant 0 : index
    %c0_6 = arith.constant 0 : index
    %9 = vector.load %arg5[%c0_5, %c0_6] : memref<128x128xbf16, #tpu.memory_space<vmem>>, vector<128x128xbf16>
    %cst_7 = arith.constant dense<0.000000e+00> : vector<64x128xf32>
    %10 = tpu.matmul %8, %9, %cst_7 {dimension_numbers = #tpu.dot_dimension_numbers<[1], [0], [0], [1], [0, 0, 1, 1], [], []>} : vector<64x128xbf16>, vector<128x128xbf16>, vector<64x128xf32> -> vector<64x128xf32>
    %c0_8 = arith.constant 0 : index
    %c0_9 = arith.constant 0 : index
    %11 = vector.load %arg6[%c0_8, %c0_9] : memref<1x128xf32, #tpu.memory_space<vmem>>, vector<1x128xf32>
    %12 = vector.broadcast %11 : vector<1x128xf32> to vector<64x128xf32>
    %13 = arith.addf %10, %12 : vector<64x128xf32>
    %14 = math.tanh %13 : vector<64x128xf32>
    %15 = arith.truncf %14 : vector<64x128xf32> to vector<64x128xbf16>
    %c0_10 = arith.constant 0 : index
    %c0_11 = arith.constant 0 : index
    %16 = vector.load %arg7[%c0_10, %c0_11] : memref<128x5xbf16, #tpu.memory_space<vmem>>, vector<128x5xbf16>
    %cst_12 = arith.constant dense<0.000000e+00> : vector<64x5xf32>
    %17 = tpu.matmul %15, %16, %cst_12 {dimension_numbers = #tpu.dot_dimension_numbers<[1], [0], [0], [1], [0, 0, 1, 1], [], []>} : vector<64x128xbf16>, vector<128x5xbf16>, vector<64x5xf32> -> vector<64x5xf32>
    %c0_13 = arith.constant 0 : index
    %c0_14 = arith.constant 0 : index
    %18 = vector.load %arg8[%c0_13, %c0_14] : memref<1x5xf32, #tpu.memory_space<vmem>>, vector<1x5xf32>
    %19 = vector.broadcast %18 : vector<1x5xf32> to vector<64x5xf32>
    %20 = arith.addf %17, %19 : vector<64x5xf32>
    %21 = vector.extract_strided_slice %20 {offsets = [0, 0], sizes = [64, 4], strides = [1, 1]} : vector<64x5xf32> to vector<64x4xf32>
    %22 = vector.extract_strided_slice %20 {offsets = [0, 4], sizes = [64, 1], strides = [1, 1]} : vector<64x5xf32> to vector<64x1xf32>
    %cst_15 = arith.constant dense<0xFF800000> : vector<64xf32>
    %23 = vector.multi_reduction <maximumf>, %21, %cst_15 [1] : vector<64x4xf32> to vector<64xf32>
    %24 = vector.shape_cast %23 : vector<64xf32> to vector<64x1xf32>
    %25 = vector.broadcast %24 : vector<64x1xf32> to vector<64x4xf32>
    %26 = arith.subf %21, %25 : vector<64x4xf32>
    %27 = math.exp %26 : vector<64x4xf32>
    %cst_16 = arith.constant dense<0.000000e+00> : vector<64xf32>
    %28 = vector.multi_reduction <add>, %27, %cst_16 [1] : vector<64x4xf32> to vector<64xf32>
    %29 = vector.shape_cast %28 : vector<64xf32> to vector<64x1xf32>
    %30 = tpu.reciprocal %29 {approx = true} : vector<64x1xf32> -> vector<64x1xf32>
    %31 = math.log %29 : vector<64x1xf32>
    %c0_17 = arith.constant 0 : index
    %c0_18 = arith.constant 0 : index
    %32 = vector.load %arg2[%c0_17, %c0_18] : memref<64x1xi32, #tpu.memory_space<vmem>>, vector<64x1xi32>
    %33 = tpu.iota {dimensions = array<i32: 1>} : vector<64x4xi32>
    %34 = vector.broadcast %32 : vector<64x1xi32> to vector<64x4xi32>
    %35 = arith.cmpi eq, %33, %34 : vector<64x4xi32>
    %cst_19 = arith.constant 0.000000e+00 : f32
    %36 = vector.broadcast %cst_19 : f32 to vector<64x4xf32>
    %37 = arith.select %35, %26, %36 : vector<64x4xi1>, vector<64x4xf32>
    %cst_20 = arith.constant dense<0.000000e+00> : vector<64xf32>
    %38 = vector.multi_reduction <add>, %37, %cst_20 [1] : vector<64x4xf32> to vector<64xf32>
    %39 = vector.shape_cast %38 : vector<64xf32> to vector<64x1xf32>
    %40 = arith.subf %39, %31 : vector<64x1xf32>
    %41 = arith.mulf %27, %26 : vector<64x4xf32>
    %cst_21 = arith.constant dense<0.000000e+00> : vector<64xf32>
    %42 = vector.multi_reduction <add>, %41, %cst_21 [1] : vector<64x4xf32> to vector<64xf32>
    %43 = vector.shape_cast %42 : vector<64xf32> to vector<64x1xf32>
    %44 = arith.mulf %43, %30 : vector<64x1xf32>
    %45 = arith.subf %31, %44 : vector<64x1xf32>
    %46 = tpu.iota {dimensions = array<i32: 1>} : vector<64x128xi32>
    %c0_i32 = arith.constant 0 : i32
    %47 = vector.broadcast %c0_i32 : i32 to vector<64x128xi32>
    %48 = arith.cmpi eq, %46, %47 : vector<64x128xi32>
    %c1_i32 = arith.constant 1 : i32
    %49 = vector.broadcast %c1_i32 : i32 to vector<64x128xi32>
    %50 = arith.cmpi eq, %46, %49 : vector<64x128xi32>
    %c2_i32 = arith.constant 2 : i32
    %51 = vector.broadcast %c2_i32 : i32 to vector<64x128xi32>
    %52 = arith.cmpi eq, %46, %51 : vector<64x128xi32>
    %cst_22 = arith.constant 0.000000e+00 : f32
    %53 = vector.shape_cast %45 : vector<64x1xf32> to vector<64x1xf32>
    %54 = vector.broadcast %53 : vector<64x1xf32> to vector<64x128xf32>
    %55 = vector.broadcast %cst_22 : f32 to vector<64x128xf32>
    %56 = arith.select %52, %54, %55 : vector<64x128xi1>, vector<64x128xf32>
    %57 = vector.shape_cast %22 : vector<64x1xf32> to vector<64x1xf32>
    %58 = vector.broadcast %57 : vector<64x1xf32> to vector<64x128xf32>
    %59 = arith.select %50, %58, %56 : vector<64x128xi1>, vector<64x128xf32>
    %60 = vector.shape_cast %40 : vector<64x1xf32> to vector<64x1xf32>
    %61 = vector.broadcast %60 : vector<64x1xf32> to vector<64x128xf32>
    %62 = arith.select %48, %61, %59 : vector<64x128xi1>, vector<64x128xf32>
    %c0_23 = arith.constant 0 : index
    %c0_24 = arith.constant 0 : index
    %63 = vector.load %arg9[%c0_23, %c0_24] : memref<64x128xf32, #tpu.memory_space<vmem>>, vector<64x128xf32>
    tpu.vector_store %arg9[%c0_23, %c0_24], %62 {strides = array<i32>} : memref<64x128xf32, #tpu.memory_space<vmem>>, vector<64x128xf32>,
    return
  }
  func.func @transform_0(%arg0: i32) -> (i32, i32) {
    %c0_i32 = arith.constant 0 : i32
    %c0_i32_0 = arith.constant 0 : i32
    return %arg0, %c0_i32 : i32, i32
  }
  func.func @transform_1(%arg0: i32) -> (i32, i32) {
    %c0_i32 = arith.constant 0 : i32
    %c0_i32_0 = arith.constant 0 : i32
    return %arg0, %c0_i32 : i32, i32
  }
  func.func @transform_2(%arg0: i32) -> (i32, i32) {
    %c0_i32 = arith.constant 0 : i32
    %c0_i32_0 = arith.constant 0 : i32
    %c0_i32_1 = arith.constant 0 : i32
    return %c0_i32, %c0_i32_0 : i32, i32
  }
  func.func @transform_3(%arg0: i32) -> (i32, i32) {
    %c0_i32 = arith.constant 0 : i32
    %c0_i32_0 = arith.constant 0 : i32
    %c0_i32_1 = arith.constant 0 : i32
    return %c0_i32, %c0_i32_0 : i32, i32
  }
  func.func @transform_4(%arg0: i32) -> (i32, i32) {
    %c0_i32 = arith.constant 0 : i32
    %c0_i32_0 = arith.constant 0 : i32
    %c0_i32_1 = arith.constant 0 : i32
    return %c0_i32, %c0_i32_0 : i32, i32
  }
  func.func @transform_5(%arg0: i32) -> (i32, i32) {
    %c0_i32 = arith.constant 0 : i32
    %c0_i32_0 = arith.constant 0 : i32
    %c0_i32_1 = arith.constant 0 : i32
    return %c0_i32, %c0_i32_0 : i32, i32
  }
  func.func @transform_6(%arg0: i32) -> (i32, i32) {
    %c0_i32 = arith.constant 0 : i32
    %c0_i32_0 = arith.constant 0 : i32
    %c0_i32_1 = arith.constant 0 : i32
    return %c0_i32, %c0_i32_0 : i32, i32
  }
  func.func @transform_7(%arg0: i32) -> (i32, i32) {
    %c0_i32 = arith.constant 0 : i32
    %c0_i32_0 = arith.constant 0 : i32
    %c0_i32_1 = arith.constant 0 : i32
    return %c0_i32, %c0_i32_0 : i32, i32
  }
  func.func @transform_8(%arg0: i32) -> (i32, i32) {
    %c0_i32 = arith.constant 0 : i32
    %c0_i32_0 = arith.constant 0 : i32
    return %arg0, %c0_i32 : i32, i32
  }
}

</mosaic_0001>

<bundles_post_ra>
// kernel: tpu_custom_call.1
= control target key start
LH: loop header
LB: loop body
LE: loop exit
PB: predicated region body
PF: predicated region fallthrough
CT: control target
= control target key end

     0   :  { %13 = vsyncpa [#allocation3], 0  ;;  %s1717_s0 = inlined_call_operand.vmem [shape: f32[128,8], index: 0, kind: input, shape index: {}]   ;;  %s1718_s1 = inlined_call_operand.vmem [shape: s32[128,1], index: 1, kind: input, shape index: {}]   ;;  %s1719_s2 = inlined_call_operand.vmem [shape: bf16[8,128], index: 2, kind: input, shape index: {}]   ;;  %s1720_s3 = inlined_call_operand.vmem [shape: f32[1,128], index: 3, kind: input, shape index: {}]   ;;  %s1721_s4 = inlined_call_operand.vmem [shape: bf16[128,128], index: 4, kind: input, shape index: {}]   ;;  %s1722_s5 = inlined_call_operand.vmem [shape: f32[1,128], index: 5, kind: input, shape index: {}]   ;;  %s1723_s6 = inlined_call_operand.vmem [shape: bf16[128,5], index: 6, kind: input, shape index: {}]   ;;  %s1724_s7 = inlined_call_operand.vmem [shape: f32[1,5], index: 7, kind: input, shape index: {}]   ;;  %s1725_s8 = inlined_call_operand.hbm [shape: f32[128,128], index: 8, kind: output, shape index: {}]  }
   0x1   :  { %15 = vsyncpa [#allocation3 + $0x1], 0  ;;  %s1363_s27 = smov 0   ;;  %s1365_s28 = smov 0  }
   0x2   :  { %s1367_s29 = smov 0   ;;  %s1369_s30 = smov 0  }
   0x3 LB: > { %s1384_s9 = sadd.s32 4294967295, %s1312_s30   ;;  %s1003_s10 = sadd.s32 4294967294, %s1312_s30   ;;  %s1312_s30 = sphi %s1369_s30, %s1731_s30   ;;  %s1308_s29 = sphi %s1367_s29, %s1730_s29   ;;  %s1304_s28 = sphi %s1365_s28, %s1729_s28   ;;  %s1300_s27 = sphi %s1363_s27, %s1728_s27  }
   0x4   : > { %s1388_s11 = sadd.s32 1, %s1312_s30   ;;  %s206_s12 = sadd.s32 1, %s1308_s29 }
   0x5   : > { %s203_s13 = ssub.s32 %s1312_s30, %s1388_s11  ;;  %p216_p0 = scmp.ne.s32.totalorder %s1308_s29, %s1304_s28 }
   0x6   : > { %p204_p1 = scmp.eq.s32.totalorder %s203_s13, 0  ;;  %p217_p2 = scmp.eq.s32.totalorder %s1384_s9, 1 }
   0x7   : > { %p222_p3 = scmp.ne.s32.totalorder %s1304_s28, %s1300_s27  ;;  %p223_p4 = scmp.eq.s32.totalorder %s1003_s10, 1 }
   0x8   : > { %s1399_s14 = scalar_select %p204_p1, %s1308_s29, %s206_s12  }
   0x9   : > { %p1401_p5 = por %p217_p2, %p216_p0  ;;  %p1405_p6 = por %p223_p4, %p222_p3 }
   0xa   : > { %p1006_p7 = scmp.ge.s32.totalorder %s1312_s30, 1  ;;  %p277_p8 = scmp.lt.s32.totalorder %s1312_s30, 3 }
   0xc   : > { %p278_p9 = pnand %p1006_p7, %p277_p8 }
   0xd   : > { %s1008_s19 = sshll.u32 (!%p278_p9), %s1384_s9, 3  ;;  %s313_s17 = sand.u32 (!%p278_p9), 1, %s1304_s28  }
   0xe   : > { %281 = sbr.rel (%p278_p9) target bundleno = 855 (0x357), region = 52  ;;  %p317_p10 = scmp.lt.s32.totalorder (!%p278_p9), %s1008_s19, 15 }
   0xf   : > { %s1007_s18 = sshll.u32 (!%p278_p9), %s313_s17, 6  ;;  %s1101_s22 = sshll.u32 (!%p278_p9), %s1384_s9, 6 }
  0x10   : > { %s1600_s21 = scalar_lea.vmem (!%p278_p9), [#allocation2], %s1007_s18  ;;  %s914_s9 = scalar_lea.sflag (!%p278_p9), [#allocation3], %s313_s17 }
  0x11   : > { %s926_s26 = sshll.u32 (!%p278_p9), %s1600_s21, 4  ;;  %s1270_s18 = scalar_lea.hbm (!%p278_p9), %s1725_s8, 128  ;;  %s927_s26 = int_to_ptr.vmem [resolvable:$true] %s926_s26 }
  0x13   : > { %v342_v0 = vld [vmem:[%s1719_s2] sm:$0xf]  ;;  %vm360_vm0 = vcmask 1043456   ;;  %s1733_s19 = smov (!%p317_p10, %s1008_s19), 15  ;;  %vm347_vm1 = vcmask 64512   ;;  %v1092_v8 = vld [vmem:[%s1721_s4 + $0x38] sm:$0xff] }
  0x14   : > { %v362_v1 = vsel %vm360_vm0, %v342_v0, 0  ;;  %s1009_s20 = sshll.u32 %s1733_s19, 3  ;;  %473 = vmatpush.bf16.msra.mxu1 %v1092_v8  ;;  %v1091_v9 = vld [vmem:[%s1721_s4 + $0x30] sm:$0xff]  ;;  %1102 = vmatpush.bf16.msra.mxu3 %v1092_v8  ;;  %v1090_v10 = vld [vmem:[%s1721_s4 + $0x28] sm:$0xff]  ;;  %v1089_v17 = vld [vmem:[%s1721_s4 + $0x20] sm:$0xff]  ;;  %vm611_vm2 = vcmask 31744  }
  0x15   : > { %371 = vmatpush.bf16.msra.mxu0 %v362_v1  ;;  %s320_s23 = scalar_lea.vmem %s1717_s0, %s1009_s20  ;;  %v1088_v18 = vld [vmem:[%s1721_s4 + $0x18] sm:$0xff]  ;;  %v1087_v19 = vld [vmem:[%s1721_s4 + $0x10] sm:$0xff]  ;;  %v1086_v20 = vld [vmem:[%s1721_s4 + $0x8] sm:$0xff]  ;;  %s1486_s13 = scalar_lea.vmem %s1718_s1, %s1009_s20 }
  0x16   : > { %v330_v2 = vld [vmem:[%s320_s23] sm:$0xff]  ;;  %v331_v3 = vld [vmem:[%s320_s23 + $0x8] sm:$0xff]  ;;  %v332_v5 = vld [vmem:[%s320_s23 + $0x10] sm:$0xff] }
  0x17   : > { %v338_v4 = vpack.c.bf16 %v331_v3, %v330_v2  ;;  %v333_v6 = vld [vmem:[%s320_s23 + $0x18] sm:$0xff]  ;;  %v334_v11 = vld [vmem:[%s320_s23 + $0x20] sm:$0xff]  ;;  %v335_v12 = vld [vmem:[%s320_s23 + $0x28] sm:$0xff] }
  0x18   : > { %v339_v7 = vpack.c.bf16 %v333_v6, %v332_v5  ;;  %474 = vmatpush.bf16.msra.mxu1 %v1091_v9  ;;  %1103 = vmatpush.bf16.msra.mxu3 %v1091_v9  ;;  %v340_v13 = vpack.c.bf16 %v335_v12, %v334_v11  ;;  %v336_v14 = vld [vmem:[%s320_s23 + $0x30] sm:$0xff]  ;;  %v337_v15 = vld [vmem:[%s320_s23 + $0x38] sm:$0xff]  ;;  %v1085_v21 = vld [vmem:[%s1721_s4] sm:$0xff]  ;;  %s925_s23 = scalar_lea.hbm %s1725_s8, %s1101_s22 }
  0x19   : > { %1012 = vmatmul.msk.bf16.vlgmr.msra.gmra.mxu0 %vm347_vm1, %v338_v4  ;;  %v341_v16 = vpack.c.bf16 %v337_v15, %v336_v14  ;;  %v1167_v23 = vld [vmem:[%s1720_s3] ss:$0 sm:$0xff]  ;;  %v1100_v38 = vld [vmem:[%s1723_s6 + $0x38] sm:$0xff]  ;;  %v1099_v40 = vld [vmem:[%s1723_s6 + $0x30] sm:$0xff]  ;;  %s928_s10 = sshll.u32 %s925_s23, 4  ;;  %s929_s10 = int_to_ptr.hbm [resolvable:$true] %s928_s10 }
  0x1a   : > { %1110 = vmatpush.bf16.msra.mxu2 %v1100_v38  ;;  %v1098_v43 = vld [vmem:[%s1723_s6 + $0x28] sm:$0xff]  ;;  %v1097_v54 = vld [vmem:[%s1723_s6 + $0x20] sm:$0xff]  ;;  %v1096_v55 = vld [vmem:[%s1723_s6 + $0x18] sm:$0xff]  ;;  %s1264_s12 = sshra.s32 %s929_s10, 4  ;;  %s1265_s12 = int_to_ptr.hbm [resolvable:$true] %s1264_s12 }
  0x1b   : > { %v1095_v56 = vld [vmem:[%s1723_s6 + $0x10] sm:$0xff]  ;;  %v1094_v57 = vld [vmem:[%s1723_s6 + $0x8] sm:$0xff]  ;;  %v1093_v58 = vld [vmem:[%s1723_s6] sm:$0xff]  ;;  %p1271_p0 = scmp.lt.s32.totalorder %s1265_s12, %s1725_s8 }
  0x1c   : > { %475 = vmatpush.bf16.msra.mxu1 %v1090_v10  ;;  %1104 = vmatpush.bf16.msra.mxu3 %v1090_v10  ;;  %v1168_v60 = vld [vmem:[%s1722_s5] ss:$0 sm:$0xff]  ;;  %v709_v11 = vld [vmem:[%s1486_s13 + $0x8] sm:$0xff]  ;;  %v710_v14 = vld [vmem:[%s1486_s13 + $0x10] sm:$0xff] }
  0x1d   : > { %v708_v12 = vld [vmem:[%s1486_s13] sm:$0xff] }
  0x1e   : > { %1111 = vmatpush.bf16.msra.mxu2 %v1099_v40 }
  0x20   : > { %476 = vmatpush.bf16.msra.mxu1 %v1089_v17  ;;  %1105 = vmatpush.bf16.msra.mxu3 %v1089_v17 }
  0x22   : > { %1112 = vmatpush.bf16.msra.mxu2 %v1098_v43 }
  0x24   : > { %477 = vmatpush.bf16.msra.mxu1 %v1088_v18  ;;  %1106 = vmatpush.bf16.msra.mxu3 %v1088_v18  ;;  %v711_v18 = vld [vmem:[%s1486_s13 + $0x18] sm:$0xff] }
  0x26   : > { %1113 = vmatpush.bf16.msra.mxu2 %v1097_v54 }
  0x28   : > { %478 = vmatpush.bf16.msra.mxu1 %v1087_v19  ;;  %1107 = vmatpush.bf16.msra.mxu3 %v1087_v19  ;;  %v712_v19 = vld [vmem:[%s1486_s13 + $0x20] sm:$0xff] }
  0x29   : > { %1013 = vmatmul.msk.bf16.gmra.mxu0 %vm347_vm1, %v339_v7 }
  0x2a   : > { %1114 = vmatpush.bf16.msra.mxu2 %v1096_v55 }
  0x2c   : > { %479 = vmatpush.bf16.msra.mxu1 %v1086_v20  ;;  %1108 = vmatpush.bf16.msra.mxu3 %v1086_v20 }
  0x2e   : > { %1115 = vmatpush.bf16.msra.mxu2 %v1095_v56 }
  0x30   : > { %480 = vmatpush.bf16.msra.mxu1 %v1085_v21  ;;  %1109 = vmatpush.bf16.msra.mxu3 %v1085_v21 }
  0x32   : > { %1116 = vmatpush.bf16.msra.mxu2 %v1094_v57 }
  0x34   : > { %582 = vmatpush.bf16.msrb.mxu1 %v1100_v38 }
  0x36   : > { %1117 = vmatpush.bf16.msra.mxu2 %v1093_v58 }
  0x38   : > { %583 = vmatpush.bf16.msrb.mxu1 %v1099_v40 }
  0x39   : > { %1014 = vmatmul.msk.bf16.gmra.mxu0 %vm347_vm1, %v340_v13  ;;  %v1314_v13 = vmov 0  }
  0x3a   : > { %1162 = vset.pattern.permute.xlu2 %v1314_v13  ;;  %1161 = vset.pattern.permute.xlu1 %v1314_v13 }
  0x3b   : > { %722 = vperm.xlu2 %1162, %v709_v11   ;;  %719 = vperm.xlu1 %1161, %v708_v12  }
  0x3c   : > { %584 = vmatpush.bf16.msrb.mxu1 %v1098_v43  ;;  %1163 = vset.pattern.permute.xlu0 %v1314_v13 }
  0x3d   : > { %725 = vperm.xlu0 %1163, %v710_v14  }
  0x40   : > { %585 = vmatpush.bf16.msrb.mxu1 %v1097_v54 }
  0x43   : > { %728 = vperm.xlu2 %1162, %v711_v18   ;;  %731 = vperm.xlu1 %1161, %v712_v19  }
  0x44   : > { %586 = vmatpush.bf16.msrb.mxu1 %v1096_v55 }
  0x48   : > { %587 = vmatpush.bf16.msrb.mxu1 %v1095_v56 }
  0x49   : > { %1015 = vmatmul.msk.bf16.gmra.mxu0 %vm347_vm1, %v341_v16 }
  0x4c   : > { %588 = vmatpush.bf16.msrb.mxu1 %v1094_v57 }
  0x50   : > { %589 = vmatpush.bf16.msrb.mxu1 %v1093_v58 }
  0x96   : > { %v373_v22 = vpop.f32.mrf.mxu0 }
  0x97   : > { %v374_v24 = vadd.f32 %v1167_v23, %v373_v22 }
  0x99   : > { %1170 = vtanh.f32 %v374_v24  ;;  %v713_v24 = vld [vmem:[%s1486_s13 + $0x28] sm:$0xff] }
  0x9a   : > { %734 = vperm.xlu2 %1162, %v713_v24  }
  0x9e   : > { %v375_v25 = vpop.f32.mrf.mxu0 }
  0x9f   : > { %v376_v26 = vadd.f32 %v1167_v23, %v375_v25  ;;  %v1171_v27 = vpop.eup %1170  ;;  %v714_v25 = vld [vmem:[%s1486_s13 + $0x30] sm:$0xff] }
  0xa0   : > { %737 = vperm.xlu1 %1161, %v714_v25  }
  0xa1   : > { %1172 = vtanh.f32 %v376_v26 }
  0xa6   : > { %v378_v28 = vpop.f32.mrf.mxu0 }
  0xa7   : > { %v1173_v29 = vpop.eup %1172  ;;  %v379_v31 = vadd.f32 %v1167_v23, %v378_v28 }
  0xa8   : > { %v401_v30 = vpack.c.bf16 %v1173_v29, %v1171_v27  ;;  %v715_v29 = vld [vmem:[%s1486_s13 + $0x38] sm:$0xff]  ;;  %s1266_s13 = scalar_lea.hbm %s1265_s12, 64 }
  0xa9   : > { %1174 = vtanh.f32 %v379_v31  ;;  %740 = vperm.xlu2 %1162, %v715_v29   ;;  %p1267_p11 = scmp.ne.s32.totalorder %s1265_s12, %s1266_s13  ;;  %p1272_p1 = scmp.lt.s32.totalorder %s1270_s18, %s1266_s13 }
  0xaa   : > { %481 = vmatmul.bf16.vlgmr.msra.gmra.mxu1 %v401_v30 }
  0xab   : > { %p1268_p12 = pnand %p1267_p11, %p1401_p5  ;;  %p1273_p2 = por %p1272_p1, %p1271_p0 }
  0xad   : > { %p1269_p13 = pneg %p1268_p12 }
  0xae   : > { %v380_v32 = vpop.f32.mrf.mxu0 }
  0xaf   : > { %v381_v33 = vadd.f32 %v1167_v23, %v380_v32  ;;  %v1175_v34 = vpop.eup %1174  ;;  %p1274_p3 = pnand %p1273_p2, %p1269_p13 }
  0xb1   : > { %1176 = vtanh.f32 %v381_v33  ;;  %v1315_v33 = vmov 4  }
  0xb2   : > { %1164 = vset.pattern.permute.xlu2 %v1315_v33  ;;  %1166 = vset.pattern.permute.xlu1 %v1315_v33 }
  0xb3   : > { %1165 = vset.pattern.permute.xlu0 %v1315_v33 }
  0xb6   : > { %v383_v35 = vpop.f32.mrf.mxu0 }
  0xb7   : > { %v1177_v36 = vpop.eup %1176  ;;  %v384_v39 = vadd.f32 %v1167_v23, %v383_v35 }
  0xb8   : > { %v402_v37 = vpack.c.bf16 %v1177_v36, %v1175_v34  ;;  %v1169_v34 = vld [vmem:[%s1724_s7] ss:$0 sm:$0xff] }
  0xb9   : > { %1178 = vtanh.f32 %v384_v39 }
  0xba   : > { %486 = vmatmul.bf16.vlgmr.msra.gmra.mxu3 %v402_v37 }
  0xbe   : > { %v385_v41 = vpop.f32.mrf.mxu0 }
  0xbf   : > { %v386_v42 = vadd.f32 %v1167_v23, %v385_v41  ;;  %v1179_v44 = vpop.eup %1178 }
  0xc1   : > { %1180 = vtanh.f32 %v386_v42 }
  0xc6   : > { %v388_v45 = vpop.f32.mrf.mxu0 }
  0xc7   : > { %v1181_v46 = vpop.eup %1180  ;;  %v389_v48 = vadd.f32 %v1167_v23, %v388_v45 }
  0xc8   : > { %v403_v47 = vpack.c.bf16 %v1181_v46, %v1179_v44 }
  0xc9   : > { %1182 = vtanh.f32 %v389_v48 }
  0xca   : > { %491 = vmatmul.bf16.gmra.mxu3 %v403_v47 }
  0xce   : > { %v390_v49 = vpop.f32.mrf.mxu0 }
  0xcf   : > { %v391_v50 = vadd.f32 %v1167_v23, %v390_v49  ;;  %v1183_v51 = vpop.eup %1182 }
  0xd1   : > { %1184 = vtanh.f32 %v391_v50 }
  0xd7   : > { %v1185_v52 = vpop.eup %1184 }
  0xd8   : > { %v404_v53 = vpack.c.bf16 %v1185_v52, %v1183_v51 }
  0xda   : > { %496 = vmatmul.bf16.gmra.mxu3 %v404_v53 }
 0x127   : > { %v482_v59 = vpop.f32.mrf.mxu1 }
 0x128   : > { %v483_v61 = vadd.f32 %v1168_v60, %v482_v59  ;;  %v726_v59 = vpop.permute.xlu0 %725 }
 0x12a   : > { %1186 = vtanh.f32 %v483_v61  ;;  %v723_v61 = vpop.permute.xlu2 %722 }
 0x12f   : > { %v484_v62 = vpop.f32.mrf.mxu1 }
 0x130   : > { %v485_v63 = vadd.f32 %v1168_v60, %v484_v62  ;;  %v1187_v0 = vpop.eup %1186 }
 0x132   : > { %1188 = vtanh.f32 %v485_v63  ;;  %v720_v63 = vpop.permute.xlu1 %719 }
 0x138   : > { %v1189_v1 = vpop.eup %1188 }
 0x139   : > { %v510_v2 = vpack.c.bf16 %v1189_v1, %v1187_v0 }
 0x13b   : > { %590 = vmatmul.bf16.vlgmr.msrb.gmra.mxu1 %v510_v2 }
 0x13d   : > { %v487_v3 = vpop.f32.mrf.mxu3 }
 0x13e   : > { %v488_v4 = vadd.f32 %v1168_v60, %v487_v3 }
 0x140   : > { %1190 = vtanh.f32 %v488_v4 }
 0x145   : > { %v489_v5 = vpop.f32.mrf.mxu3 }
 0x146   : > { %v490_v6 = vadd.f32 %v1168_v60, %v489_v5  ;;  %v1191_v7 = vpop.eup %1190  ;;  %v729_v5 = vpop.permute.xlu2 %728 }
 0x148   : > { %1192 = vtanh.f32 %v490_v6 }
 0x14d   : > { %v492_v8 = vpop.f32.mrf.mxu3 }
 0x14e   : > { %v1193_v9 = vpop.eup %1192  ;;  %v493_v15 = vadd.f32 %v1168_v60, %v492_v8  ;;  %v732_v8 = vpop.permute.xlu1 %731 }
 0x14f   : > { %v511_v10 = vpack.c.bf16 %v1193_v9, %v1191_v7 }
 0x150   : > { %1194 = vtanh.f32 %v493_v15  ;;  %v1536_v15 = vpop.permute.xlu2 %734 }
 0x151   : > { %595 = vmatmul.bf16.vlgmr.msra.gmra.mxu2 %v511_v10 }
 0x155   : > { %v494_v16 = vpop.f32.mrf.mxu3 }
 0x156   : > { %v495_v17 = vadd.f32 %v1168_v60, %v494_v16  ;;  %v1195_v20 = vpop.eup %1194 }
 0x158   : > { %1196 = vtanh.f32 %v495_v17  ;;  %v1538_v17 = vpop.permute.xlu1 %737 }
 0x15d   : > { %v497_v21 = vpop.f32.mrf.mxu3 }
 0x15e   : > { %v1197_v22 = vpop.eup %1196  ;;  %v498_v26 = vadd.f32 %v1168_v60, %v497_v21  ;;  %v1542_v21 = vpop.permute.xlu2 %740 }
 0x15f   : > { %v512_v23 = vpack.c.bf16 %v1197_v22, %v1195_v20 }
 0x160   : > { %1198 = vtanh.f32 %v498_v26 }
 0x161   : > { %600 = vmatmul.bf16.gmra.mxu2 %v512_v23 }
 0x165   : > { %v499_v27 = vpop.f32.mrf.mxu3 }
 0x166   : > { %v500_v28 = vadd.f32 %v1168_v60, %v499_v27  ;;  %v1199_v30 = vpop.eup %1198  ;;  %v716_v60 = vlaneseq }
 0x168   : > { %1200 = vtanh.f32 %v500_v28  ;;  %v1528_v62 = vand.u32 127, %v716_v60 }
 0x16a   : > { %vm742_vm3 = vcmp.eq.s32.totalorder %v1528_v62, %v720_v63  ;;  %vm743_vm4 = vcmp.eq.s32.totalorder %v1528_v62, %v723_v61  ;;  %vm744_vm5 = vcmp.eq.s32.totalorder %v1528_v62, %v726_v59  ;;  %vm745_vm6 = vcmp.eq.s32.totalorder %v1528_v62, %v729_v5 }
 0x16b   : > { %vm746_vm7 = vcmp.eq.s32.totalorder %v1528_v62, %v732_v8  ;;  %vm747_vm8 = vcmp.eq.s32.totalorder %v1528_v62, %v1536_v15  ;;  %vm748_vm9 = vcmp.eq.s32.totalorder %v1528_v62, %v1538_v17  ;;  %vm749_vm10 = vcmp.eq.s32.totalorder %v1528_v62, %v1542_v21 }
 0x16c   : > { %vm840_vm11 = vcmp.eq.s32.totalorder %v1528_v62, 2  ;;  %vm839_vm12 = vcmp.eq.s32.totalorder %v1528_v62, 1  ;;  %vm838_vm13 = vcmp.eq.s32.totalorder %v1528_v62, 0 }
 0x16e   : > { %v1201_v31 = vpop.eup %1200 }
 0x16f   : > { %v513_v32 = vpack.c.bf16 %v1201_v31, %v1199_v30 }
 0x171   : > { %605 = vmatmul.bf16.gmra.mxu2 %v513_v32 }
 0x1b8   : > { %v591_v35 = vpop.f32.mrf.mxu1 }
 0x1b9   : > { %v592_v36 = vadd.f32 %v1169_v34, %v591_v35 }
 0x1bb   : > { %851 = vperm.xlu2 %1164, %v592_v36   ;;  %v612_v37 = vsel %vm611_vm2, %v592_v36, -inf }
 0x1bc   : > { %613 = vmax.xlane.f32.xlu0 %v612_v37 }
 0x1c0   : > { %v593_v38 = vpop.f32.mrf.mxu1 }
 0x1c1   : > { %v1500_v39 = vadd.f32 %v1169_v34, %v593_v38 }
 0x1c3   : > { %v615_v40 = vsel %vm611_vm2, %v1500_v39, -inf }
 0x1c4   : > { %616 = vmax.xlane.f32.xlu0 %v615_v40 }
 0x1d4   : > { %v596_v41 = vpop.f32.mrf.mxu2 }
 0x1d5   : > { %v1504_v42 = vadd.f32 %v1169_v34, %v596_v41 }
 0x1d7   : > { %v618_v43 = vsel %vm611_vm2, %v1504_v42, -inf }
 0x1d8   : > { %619 = vmax.xlane.f32.xlu1 %v618_v43 }
 0x1dc   : > { %v598_v44 = vpop.f32.mrf.mxu2 }
 0x1dd   : > { %v1508_v45 = vadd.f32 %v1169_v34, %v598_v44 }
 0x1df   : > { %v621_v46 = vsel %vm611_vm2, %v1508_v45, -inf }
 0x1e0   : > { %622 = vmax.xlane.f32.xlu1 %v621_v46 }
 0x1e4   : > { %v601_v47 = vpop.f32.mrf.mxu2 }
 0x1e5   : > { %v1512_v48 = vadd.f32 %v1169_v34, %v601_v47 }
 0x1e7   : > { %v624_v49 = vsel %vm611_vm2, %v1512_v48, -inf }
 0x1e8   : > { %625 = vmax.xlane.f32.xlu2 %v624_v49 }
 0x1ec   : > { %v603_v50 = vpop.f32.mrf.mxu2 }
 0x1ed   : > { %v1516_v51 = vadd.f32 %v1169_v34, %v603_v50 }
 0x1ef   : > { %v627_v52 = vsel %vm611_vm2, %v1516_v51, -inf }
 0x1f0   : > { %628 = vmax.xlane.f32.xlu2 %v627_v52 }
 0x1f4   : > { %v606_v53 = vpop.f32.mrf.mxu2 }
 0x1f5   : > { %v1520_v54 = vadd.f32 %v1169_v34, %v606_v53 }
 0x1f7   : > { %v630_v55 = vsel %vm611_vm2, %v1520_v54, -inf }
 0x1f8   : > { %631 = vmax.xlane.f32.xlu0 %v630_v55 }
 0x1fc   : > { %v608_v56 = vpop.f32.mrf.mxu2 }
 0x1fd   : > { %v1524_v57 = vadd.f32 %v1169_v34, %v608_v56 }
 0x1ff   : > { %v633_v58 = vsel %vm611_vm2, %v1524_v57, -inf }
 0x200   : > { %634 = vmax.xlane.f32.xlu1 %v633_v58 }
 0x215   : > { %v1548_v28 = vpop.permute.xlu2 %851 }
 0x22f   : > { %v614_v0 = vpop.xlane.xlu0 %613 }
 0x230   : > { %v636_v1 = vsub.f32 %v592_v36, %v614_v0 }
 0x232   : > { %v644_v2 = vmul.f32 1.442695, %v636_v1  ;;  %v750_v3 = vsel %vm742_vm3, %v636_v1, 0.0 }
 0x233   : > { %v758_v4 = vsel %vm611_vm2, %v750_v3, 0.0 }
 0x234   : > { %1202 = vpow2.f32 %v644_v2  ;;  %759 = vadd.xlane.f32.xlu1 %v758_v4 }
 0x237   : > { %v617_v6 = vpop.xlane.xlu0 %616 }
 0x238   : > { %v637_v7 = vsub.f32 %v1500_v39, %v617_v6 }
 0x23a   : > { %v1203_v9 = vpop.eup %1202  ;;  %v646_v10 = vmul.f32 1.442695, %v637_v7  ;;  %v751_v11 = vsel %vm743_vm4, %v637_v7, 0.0 }
 0x23b   : > { %v660_v12 = vsel %vm611_vm2, %v1203_v9, 0.0  ;;  %v761_v13 = vsel %vm611_vm2, %v751_v11, 0.0  ;;  %v790_v14 = vmul.f32 %v1203_v9, %v636_v1 }
 0x23c   : > { %1204 = vpow2.f32 %v646_v10  ;;  %661 = vadd.xlane.f32.xlu2 %v660_v12  ;;  %762 = vadd.xlane.f32.xlu0 %v761_v13 }
 0x23d   : > { %v798_v18 = vsel %vm611_vm2, %v790_v14, 0.0 }
 0x242   : > { %v1205_v16 = vpop.eup %1204 }
 0x243   : > { %v791_v19 = vmul.f32 %v1205_v16, %v637_v7  ;;  %v663_v23 = vsel %vm611_vm2, %v1205_v16, 0.0 }
 0x244   : > { %799 = vadd.xlane.f32.xlu0 %v798_v18 }
 0x245   : > { %v801_v20 = vsel %vm611_vm2, %v791_v19, 0.0 }
 0x246   : > { %802 = vadd.xlane.f32.xlu1 %v801_v20 }
 0x24b   : > { %v620_v22 = vpop.xlane.xlu1 %619 }
 0x24c   : > { %v638_v24 = vsub.f32 %v1504_v42, %v620_v22  ;;  %664 = vadd.xlane.f32.xlu0 %v663_v23 }
 0x24e   : > { %v648_v25 = vmul.f32 1.442695, %v638_v24  ;;  %v752_v26 = vsel %vm744_vm5, %v638_v24, 0.0 }
 0x24f   : > { %v764_v27 = vsel %vm611_vm2, %v752_v26, 0.0 }
 0x250   : > { %1206 = vpow2.f32 %v648_v25  ;;  %765 = vadd.xlane.f32.xlu2 %v764_v27 }
 0x253   : > { %v623_v29 = vpop.xlane.xlu1 %622 }
 0x254   : > { %v639_v30 = vsub.f32 %v1508_v45, %v623_v29 }
 0x256   : > { %v1207_v31 = vpop.eup %1206  ;;  %v650_v32 = vmul.f32 1.442695, %v639_v30  ;;  %v753_v38 = vsel %vm745_vm6, %v639_v30, 0.0 }
 0x257   : > { %v666_v33 = vsel %vm611_vm2, %v1207_v31, 0.0  ;;  %v792_v34 = vmul.f32 %v1207_v31, %v638_v24  ;;  %v767_v43 = vsel %vm611_vm2, %v753_v38, 0.0 }
 0x258   : > { %1208 = vpow2.f32 %v650_v32  ;;  %667 = vadd.xlane.f32.xlu1 %v666_v33 }
 0x259   : > { %v804_v35 = vsel %vm611_vm2, %v792_v34, 0.0 }
 0x25a   : > { %805 = vadd.xlane.f32.xlu2 %v804_v35 }
 0x25b   : > { %v626_v36 = vpop.xlane.xlu2 %625 }
 0x25c   : > { %v640_v37 = vsub.f32 %v1512_v48, %v626_v36 }
 0x25e   : > { %v1209_v40 = vpop.eup %1208  ;;  %v652_v41 = vmul.f32 1.442695, %v640_v37  ;;  %v754_v55 = vsel %vm746_vm7, %v640_v37, 0.0 }
 0x25f   : > { %v793_v44 = vmul.f32 %v1209_v40, %v639_v30  ;;  %v669_v46 = vsel %vm611_vm2, %v1209_v40, 0.0  ;;  %v770_v58 = vsel %vm611_vm2, %v754_v55, 0.0 }
 0x260   : > { %1210 = vpow2.f32 %v652_v41  ;;  %768 = vadd.xlane.f32.xlu1 %v767_v43 }
 0x261   : > { %v807_v47 = vsel %vm611_vm2, %v793_v44, 0.0 }
 0x262   : > { %670 = vadd.xlane.f32.xlu2 %v669_v46  ;;  %808 = vadd.xlane.f32.xlu0 %v807_v47 }
 0x263   : > { %v629_v49 = vpop.xlane.xlu2 %628 }
 0x264   : > { %v641_v50 = vsub.f32 %v1516_v51, %v629_v49 }
 0x266   : > { %v1211_v52 = vpop.eup %1210  ;;  %v654_v53 = vmul.f32 1.442695, %v641_v50  ;;  %v755_v3 = vsel %vm747_vm8, %v641_v50, 0.0 }
 0x267   : > { %v794_v56 = vmul.f32 %v1211_v52, %v640_v37  ;;  %v672_v60 = vsel %vm611_vm2, %v1211_v52, 0.0  ;;  %v773_v6 = vsel %vm611_vm2, %v755_v3, 0.0 }
 0x268   : > { %1212 = vpow2.f32 %v654_v53 }
 0x269   : > { %v810_v59 = vsel %vm611_vm2, %v794_v56, 0.0 }
 0x26a   : > { %771 = vadd.xlane.f32.xlu2 %v770_v58  ;;  %811 = vadd.xlane.f32.xlu1 %v810_v59 }
 0x26b   : > { %673 = vadd.xlane.f32.xlu0 %v672_v60  ;;  %v632_v61 = vpop.xlane.xlu0 %631 }
 0x26c   : > { %v642_v63 = vsub.f32 %v1520_v54, %v632_v61 }
 0x26e   : > { %v1213_v0 = vpop.eup %1212  ;;  %v656_v1 = vmul.f32 1.442695, %v642_v63  ;;  %v756_v11 = vsel %vm748_vm9, %v642_v63, 0.0 }
 0x26f   : > { %v795_v2 = vmul.f32 %v1213_v0, %v641_v50  ;;  %v675_v5 = vsel %vm611_vm2, %v1213_v0, 0.0  ;;  %v776_v13 = vsel %vm611_vm2, %v756_v11, 0.0 }
 0x270   : > { %1214 = vpow2.f32 %v656_v1 }
 0x271   : > { %v813_v4 = vsel %vm611_vm2, %v795_v2, 0.0 }
 0x272   : > { %814 = vadd.xlane.f32.xlu2 %v813_v4  ;;  %676 = vadd.xlane.f32.xlu1 %v675_v5 }
 0x273   : > { %774 = vadd.xlane.f32.xlu0 %v773_v6  ;;  %v635_v7 = vpop.xlane.xlu1 %634 }
 0x274   : > { %v643_v8 = vsub.f32 %v1524_v57, %v635_v7 }
 0x276   : > { %v1215_v9 = vpop.eup %1214  ;;  %v658_v10 = vmul.f32 1.442695, %v643_v8  ;;  %v757_v18 = vsel %vm749_vm10, %v643_v8, 0.0 }
 0x277   : > { %v796_v12 = vmul.f32 %v1215_v9, %v642_v63  ;;  %v678_v15 = vsel %vm611_vm2, %v1215_v9, 0.0  ;;  %v779_v19 = vsel %vm611_vm2, %v757_v18, 0.0 }
 0x278   : > { %1216 = vpow2.f32 %v658_v10 }
 0x279   : > { %v816_v14 = vsel %vm611_vm2, %v796_v12, 0.0 }
 0x27a   : > { %777 = vadd.xlane.f32.xlu1 %v776_v13  ;;  %679 = vadd.xlane.f32.xlu2 %v678_v15 }
 0x27b   : > { %817 = vadd.xlane.f32.xlu0 %v816_v14 }
 0x27e   : > { %v1217_v16 = vpop.eup %1216 }
 0x27f   : > { %v797_v17 = vmul.f32 %v1217_v16, %v643_v8  ;;  %v681_v20 = vsel %vm611_vm2, %v1217_v16, 0.0 }
 0x281   : > { %v819_v29 = vsel %vm611_vm2, %v797_v17, 0.0 }
 0x282   : > { %780 = vadd.xlane.f32.xlu2 %v779_v19 }
 0x283   : > { %682 = vadd.xlane.f32.xlu0 %v681_v20 }
 0x293   : > { %861 = vperm.xlu1 %1166, %v1504_v42  }
 0x297   : > { %856 = vperm.xlu0 %1165, %v1500_v39  }
 0x29a   : > { %866 = vperm.xlu2 %1164, %v1508_v45  }
 0x29b   : > { %871 = vperm.xlu1 %1166, %v1512_v48  }
 0x2a2   : > { %876 = vperm.xlu2 %1164, %v1516_v51  }
 0x2a7   : > { %v760_v48 = vpop.xlane.xlu1 %759 }
 0x2aa   : > { %886 = vperm.xlu2 %1164, %v1524_v57  }
 0x2af   : > { %v662_v21 = vpop.xlane.xlu2 %661  ;;  %v1585_v22 = vpop.xlane.xlu0 %762 }
 0x2b0   : > { %1218 = vrcp.f32 %v662_v21 }
 0x2b1   : > { %1220 = vlog2.f32 %v662_v21 }
 0x2b6   : > { %v1219_v23 = vpop.eup %1218 }
 0x2b7   : > { %v1221_v24 = vpop.eup %1220  ;;  %v800_v42 = vpop.xlane.xlu0 %799 }
 0x2b8   : > { %v693_v25 = vmul.f32 0.6931472, %v1221_v24  ;;  %v822_v39 = vmul.f32 %v1219_v23, %v800_v42 }
 0x2b9   : > { %v803_v31 = vpop.xlane.xlu1 %802 }
 0x2ba   : > { %v830_v45 = vsub.f32 %v693_v25, %v822_v39  ;;  %v782_v51 = vsub.f32 %v760_v48, %v693_v25 }
 0x2bc   : > { %v841_v57 = vsel %vm840_vm11, %v830_v45, 0.0 }
 0x2bd   : > { %v889_v26 = vsel %vm839_vm12, %v1548_v28, %v841_v57 }
 0x2be   : > { %v897_v27 = vsel %vm838_vm13, %v782_v51, %v889_v26 }
 0x2bf   : > { %905 = vst [vmem:[%s1600_s21] sm:$0xff] %v897_v27  ;;  %v665_v33 = vpop.xlane.xlu0 %664 }
 0x2c3   : > { %v1604_v30 = vpop.xlane.xlu2 %765 }
 0x2c5   : > { %820 = vadd.xlane.f32.xlu1 %v819_v29 }
 0x2cb   : > { %v668_v34 = vpop.xlane.xlu1 %667 }
 0x2cd   : > { %v806_v32 = vpop.xlane.xlu2 %805 }
 0x2d3   : > { %v769_v37 = vpop.xlane.xlu1 %768 }
 0x2d5   : > { %v671_v35 = vpop.xlane.xlu2 %670  ;;  %v809_v36 = vpop.xlane.xlu0 %808 }
 0x2d6   : > { %1222 = vrcp.f32 %v671_v35 }
 0x2d7   : > { %1224 = vlog2.f32 %v671_v35 }
 0x2dc   : > { %v1223_v47 = vpop.eup %1222 }
 0x2dd   : > { %v1606_v28 = vpop.xlane.xlu2 %771  ;;  %v812_v40 = vpop.xlane.xlu1 %811  ;;  %v825_v55 = vmul.f32 %v1223_v47, %v809_v36 }
 0x2de   : > { %881 = vperm.xlu1 %1166, %v1520_v54   ;;  %v674_v38 = vpop.xlane.xlu0 %673  ;;  %v1225_v49 = vpop.eup %1224 }
 0x2df   : > { %v699_v53 = vmul.f32 0.6931472, %v1225_v49 }
 0x2e1   : > { %v833_v3 = vsub.f32 %v699_v53, %v825_v55  ;;  %v785_v9 = vsub.f32 %v769_v37, %v699_v53 }
 0x2e3   : > { %v844_v13 = vsel %vm840_vm11, %v833_v3, 0.0 }
 0x2e5   : > { %v815_v41 = vpop.xlane.xlu2 %814  ;;  %v677_v44 = vpop.xlane.xlu1 %676 }
 0x2e6   : > { %v1609_v43 = vpop.xlane.xlu0 %774 }
 0x2ed   : > { %v680_v46 = vpop.xlane.xlu2 %679  ;;  %v1617_v61 = vpop.xlane.xlu1 %777 }
 0x2ee   : > { %1226 = vrcp.f32 %v680_v46  ;;  %v818_v52 = vpop.xlane.xlu0 %817 }
 0x2ef   : > { %1228 = vlog2.f32 %v680_v46 }
 0x2f0   : > { %1230 = vrcp.f32 %v668_v34 }
 0x2f1   : > { %1232 = vlog2.f32 %v668_v34 }
 0x2f2   : > { %1234 = vrcp.f32 %v677_v44 }
 0x2f3   : > { %1236 = vlog2.f32 %v677_v44 }
 0x2f4   : > { %v1227_v50 = vpop.eup %1226  ;;  %1238 = vrcp.f32 %v665_v33 }
 0x2f5   : > { %v1229_v54 = vpop.eup %1228  ;;  %v1611_v56 = vmul.f32 %v1227_v50, %v818_v52  ;;  %v1613_v58 = vpop.xlane.xlu2 %780  ;;  %1240 = vlog2.f32 %v665_v33 }
 0x2f6   : > { %v1615_v59 = vmul.f32 0.6931472, %v1229_v54  ;;  %v1231_v60 = vpop.eup %1230  ;;  %1242 = vrcp.f32 %v674_v38  ;;  %v683_v21 = vpop.xlane.xlu0 %682 }
 0x2f7   : > { %v1233_v63 = vpop.eup %1232  ;;  %v824_v7 = vmul.f32 %v1231_v60, %v806_v32  ;;  %1244 = vlog2.f32 %v674_v38 }
 0x2f8   : > { %v788_v0 = vsub.f32 %v1617_v61, %v1615_v59  ;;  %v836_v1 = vsub.f32 %v1615_v59, %v1611_v56  ;;  %v1235_v2 = vpop.eup %1234  ;;  %v697_v6 = vmul.f32 0.6931472, %v1233_v63  ;;  %1246 = vlog2.f32 %v683_v21 }
 0x2f9   : > { %v1237_v4 = vpop.eup %1236  ;;  %v827_v11 = vmul.f32 %v1235_v2, %v815_v41  ;;  %1248 = vrcp.f32 %v683_v21 }
 0x2fa   : > { %v1239_v5 = vpop.eup %1238  ;;  %v703_v10 = vmul.f32 0.6931472, %v1237_v4  ;;  %v832_v17 = vsub.f32 %v697_v6, %v824_v7  ;;  %v784_v42 = vsub.f32 %v1604_v30, %v697_v6  ;;  %v847_v63 = vsel %vm840_vm11, %v836_v1, 0.0 }
 0x2fb   : > { %v1241_v8 = vpop.eup %1240  ;;  %v823_v18 = vmul.f32 %v1239_v5, %v803_v31 }
 0x2fc   : > { %v695_v16 = vmul.f32 0.6931472, %v1241_v8  ;;  %v1243_v19 = vpop.eup %1242  ;;  %v835_v20 = vsub.f32 %v703_v10, %v827_v11  ;;  %v843_v25 = vsel %vm840_vm11, %v832_v17, 0.0  ;;  %v787_v48 = vsub.f32 %v1609_v43, %v703_v10 }
 0x2fd   : > { %v867_v12 = vpop.permute.xlu2 %866  ;;  %v1245_v23 = vpop.eup %1244  ;;  %v826_v45 = vmul.f32 %v1243_v19, %v812_v40 }
 0x2fe   : > { %v892_v14 = vsel %vm839_vm12, %v867_v12, %v844_v13  ;;  %v831_v24 = vsub.f32 %v695_v16, %v823_v18  ;;  %v701_v39 = vmul.f32 0.6931472, %v1245_v23  ;;  %v846_v57 = vsel %vm840_vm11, %v835_v20, 0.0  ;;  %v1247_v44 = vpop.eup %1246 }
 0x2ff   : > { %v900_v15 = vsel %vm838_vm13, %v785_v9, %v892_v14  ;;  %v783_v32 = vsub.f32 %v1585_v22, %v695_v16  ;;  %v1249_v46 = vpop.eup %1248 }
 0x300   : > { %908 = vst [vmem:[%s1600_s21 + $0x18] sm:$0xff] %v900_v15  ;;  %v834_v33 = vsub.f32 %v701_v39, %v826_v45  ;;  %v842_v34 = vsel %vm840_vm11, %v831_v24, 0.0  ;;  %v786_v38 = vsub.f32 %v1606_v28, %v701_v39  ;;  %v707_v28 = vmul.f32 0.6931472, %v1247_v44 }
 0x302   : > { %v845_v41 = vsel %vm840_vm11, %v834_v33, 0.0  ;;  %v789_v52 = vsub.f32 %v1613_v58, %v707_v28 }
 0x305   : > { %v862_v51 = vpop.permute.xlu1 %861  ;;  %v877_v26 = vpop.permute.xlu2 %876 }
 0x306   : > { %v891_v27 = vsel %vm839_vm12, %v862_v51, %v843_v25  ;;  %v894_v29 = vsel %vm839_vm12, %v877_v26, %v846_v57 }
 0x307   : > { %v899_v30 = vsel %vm838_vm13, %v784_v42, %v891_v27  ;;  %v902_v31 = vsel %vm838_vm13, %v787_v48, %v894_v29 }
 0x308   : > { %907 = vst [vmem:[%s1600_s21 + $0x10] sm:$0xff] %v899_v30 }
 0x309   : > { %910 = vst [vmem:[%s1600_s21 + $0x28] sm:$0xff] %v902_v31  ;;  %v857_v35 = vpop.permute.xlu0 %856 }
 0x30a   : > { %v890_v36 = vsel %vm839_vm12, %v857_v35, %v842_v34 }
 0x30b   : > { %v898_v37 = vsel %vm838_vm13, %v783_v32, %v890_v36 }
 0x30c   : > { %906 = vst [vmem:[%s1600_s21 + $0x8] sm:$0xff] %v898_v37 }
 0x30d   : > { %v872_v40 = vpop.permute.xlu1 %871  ;;  %v887_v54 = vpop.permute.xlu2 %886 }
 0x30e   : > { %v893_v22 = vsel %vm839_vm12, %v872_v40, %v845_v41 }
 0x30f   : > { %v901_v43 = vsel %vm838_vm13, %v786_v38, %v893_v22 }
 0x310   : > { %909 = vst [vmem:[%s1600_s21 + $0x20] sm:$0xff] %v901_v43 }
 0x338   : > { %v821_v47 = vpop.xlane.xlu1 %820 }
 0x339   : > { %v829_v49 = vmul.f32 %v1249_v46, %v821_v47 }
 0x33b   : > { %v837_v50 = vsub.f32 %v707_v28, %v829_v49 }
 0x33d   : > { %v848_v53 = vsel %vm840_vm11, %v837_v50, 0.0 }
 0x33e   : > { %v896_v55 = vsel %vm839_vm12, %v887_v54, %v848_v53 }
 0x33f   : > { %v904_v60 = vsel %vm838_vm13, %v789_v52, %v896_v55 }
 0x340   : > { %912 = vst [vmem:[%s1600_s21 + $0x38] sm:$0xff] %v904_v60 }
 0x350   : > { %v882_v58 = vpop.permute.xlu1 %881 }
 0x351   : > { %v895_v2 = vsel %vm839_vm12, %v882_v58, %v847_v63 }
 0x352   : > { %v903_v3 = vsel %vm838_vm13, %v788_v0, %v895_v2 }
 0x353   : > { %911 = vst [vmem:[%s1600_s21 + $0x30] sm:$0xff] %v903_v3 }
 0x354   : > { %1277 = shalt.err (!%p1274_p3)
}
 0x355   : > { %s1316_s17 = smov 128   ;;  %s1317_s21 = smov 8  }
 0x356   : > { %1118 = dma.vmem_to_hbm [thread:$0]  (%p1401_p5), %s927_s26, 1024, %s929_s10, %s914_s9, %s1316_s17, %s1316_s17, %s1317_s21  }
 0x357 PF: > { %p1124_p4 = scmp.ge.s32.totalorder %s1312_s30, 2  ;;  %s943_s25 = sand.u32 1, %s1300_s27  }
 0x358   : > { %s944_s23 = scalar_lea.sflag [#allocation3], %s943_s25 }
 0x359   : > { %p1121_p7 = pnand %p1124_p4, %p1405_p6 }
 0x35b   : > { %p1122_p8 = pneg %p1121_p7 }
 0x35d   : > { %1295 = dma.done.wait (%p1122_p8), %s944_s23, 1024  }
 0x35e   : > { %1297 = vsyncadd (%p1122_p8), %s944_s23, 4294966272  ;;  %p18_p9 = scmp.ge.s32.totalorder %s1388_s11, 4   ;;  %s1728_s27 = smov %s1304_s28 }
 0x35f   : > { %s1729_s28 = smov %s1308_s29  ;;  %s1730_s29 = smov %s1399_s14 }
 0x360   : > { %s1731_s30 = smov %s1388_s11  ;;  %20 = sbr.rel (!%p18_p9) target bundleno = 3 (0x3), region = 90 }
 0x365   :  { %950 = vsyncpa [#allocation3], 1 }
 0x366   :  { %952 = vsyncpa [#allocation3 + $0x1], 1 }

</bundles_post_ra>
